<compile_context>
chip_gen: v7x
topology: tpu7x:2x2x1
jax: 0.10.0
libtpu: 0.0.40
codegen_flags: <defaults>
</compile_context>

<pallas_src>
import functools

import jax
import jax.numpy as jnp
from jax.experimental import pallas as pl
from jax.experimental.pallas import tpu as pltpu

LANE = 128      # TPU lane width (last-dim tiling unit)
HIDDEN = 128    # DQN hidden width (nn.Linear(_, 128))
MIN_TB = 8      # minimum batch-tile rows (f32 sublane packing)


def _round_up(v, m):
    return (v + m - 1) // m * m


def dqn_kernel(x_ref, w1_ref, b1_ref, w2_ref, b2_ref, w3_ref, b3_ref, out_ref):
    # x arrives at its natural f32 (tb, n_obs) shape; cast to bf16 in VMEM for the MXU.
    x = x_ref[...].astype(jnp.bfloat16)

    # layer1 + ReLU  (f32 accumulation on the MXU; f32 bias/ReLU epilogue)
    h1 = jnp.dot(x, w1_ref[...], preferred_element_type=jnp.float32) + b1_ref[...]
    h1 = jnp.maximum(h1, 0.0).astype(jnp.bfloat16)

    # layer2 + ReLU
    h2 = jnp.dot(h1, w2_ref[...], preferred_element_type=jnp.float32) + b2_ref[...]
    h2 = jnp.maximum(h2, 0.0).astype(jnp.bfloat16)

    # layer3 (no activation).  w3/b3 are lane-padded to 128 so the dot stays lane-dense in
    # VMEM; only the real n_actions columns are stored (narrow output block in HBM).
    q = jnp.dot(h2, w3_ref[...], preferred_element_type=jnp.float32) + b3_ref[...]
    out_ref[...] = q[:, :out_ref.shape[-1]]


def prepare_params(params):
    """One-time param prep (hoisted out of the per-call forward path):
    cast weights to bf16 / biases to f32, lane-pad only layer3's tiny output dim."""
    w1, b1, w2, b2, w3, b3 = params
    n_obs, h = w1.shape
    n_actions = w3.shape[1]
    assert h == HIDDEN and w2.shape == (HIDDEN, HIDDEN) and w3.shape[0] == HIDDEN, (
        "dqn_kernel assumes hidden width == 128 (as in the PyTorch DQN)")
    n_pad = _round_up(max(n_actions, 1), LANE)

    w1p = w1.astype(jnp.bfloat16)                                   # (n_obs, 128)
    b1p = jnp.reshape(b1, (1, HIDDEN)).astype(jnp.float32)          # (1, 128)
    w2p = w2.astype(jnp.bfloat16)                                   # (128, 128)
    b2p = jnp.reshape(b2, (1, HIDDEN)).astype(jnp.float32)          # (1, 128)
    w3p = jnp.zeros((HIDDEN, n_pad), jnp.bfloat16).at[:, :n_actions].set(
        w3.astype(jnp.bfloat16))                                    # (128, n_pad)
    b3p = jnp.zeros((1, n_pad), jnp.float32).at[:, :n_actions].set(
        jnp.reshape(b3, (1, n_actions)).astype(jnp.float32))        # (1, n_pad)
    prepped = (w1p, b1p, w2p, b2p, w3p, b3p)
    return jax.tree_util.tree_map(jax.device_put, prepped), n_actions


@functools.partial(jax.jit, static_argnames=("n_actions", "batch_tile"))
def dqn_forward(x, prepared_params, *, n_actions, batch_tile=2048):
    """DQN forward pass. `prepared_params` must come from prepare_params()."""
    w1, b1, w2, b2, w3, b3 = prepared_params
    batch, n_obs = x.shape
    assert w1.shape == (n_obs, HIDDEN) and w3.shape[1] >= n_actions

    # Batch tiling: few, large tiles (per-grid-step overhead ~0.35us), never a nearly
    # empty trailing tile, and >= 2 tiles whenever the batch allows so v7x's two
    # TensorCores both get work via the "parallel" grid axis.
    num_tiles = pl.cdiv(batch, batch_tile)
    if num_tiles < 2 and batch >= 2 * MIN_TB:
        num_tiles = 2
    tb = _round_up(pl.cdiv(batch, num_tiles), MIN_TB)
    grid = (pl.cdiv(batch, tb),)   # ragged last tile: OOB reads padded, OOB writes dropped

    def resident(shape):
        # Constant index_map -> block stays VMEM-resident across all batch tiles;
        # a single buffer is enough (no second, never-filled copy).
        return pl.BlockSpec(shape, lambda i: (0, 0), pipeline_mode=pl.Buffered(1))

    return pl.pallas_call(
        dqn_kernel,
        out_shape=jax.ShapeDtypeStruct((batch, n_actions), jnp.float32),
        grid=grid,
        in_specs=[
            pl.BlockSpec((tb, n_obs), lambda i: (i, 0)),   # x: pipelined over batch tiles
            resident(w1.shape),                            # w1 (n_obs, 128) bf16
            resident(b1.shape),                            # b1 (1, 128) f32
            resident(w2.shape),                            # w2 (128, 128) bf16
            resident(b2.shape),                            # b2 (1, 128) f32
            resident(w3.shape),                            # w3 (128, n_pad) bf16
            resident(b3.shape),                            # b3 (1, n_pad) f32
        ],
        out_specs=pl.BlockSpec((tb, n_actions), lambda i: (i, 0)),
        compiler_params=pltpu.CompilerParams(
            dimension_semantics=("parallel",)),            # v7x: shard batch tiles over TCs
    )(x, w1, b1, w2, b2, w3, b3)


def init_linear(key, fan_in, fan_out):
    """Mimics PyTorch nn.Linear default init (U[-1/sqrt(fan_in), 1/sqrt(fan_in)]).
    Weight stored transposed ([in, out]) so the kernel computes x @ W."""
    kw, kb = jax.random.split(key)
    bound = 1.0 / jnp.sqrt(jnp.float32(fan_in))
    w = jax.random.uniform(kw, (fan_in, fan_out), jnp.float32, -bound, bound)
    b = jax.random.uniform(kb, (1, fan_out), jnp.float32, -bound, bound)
    return w, b


def make_params(key, n_observations, n_actions, hidden=HIDDEN):
    k1, k2, k3 = jax.random.split(key, 3)
    w1, b1 = init_linear(k1, n_observations, hidden)
    w2, b2 = init_linear(k2, hidden, hidden)
    w3, b3 = init_linear(k3, hidden, n_actions)
    return (w1, b1, w2, b2, w3, b3)


def dqn_reference(x, params):
    w1, b1, w2, b2, w3, b3 = params
    h1 = jnp.maximum(x @ w1 + b1, 0.0)
    h2 = jnp.maximum(h1 @ w2 + b2, 0.0)
    return h2 @ w3 + b3


# TODO(synk): the PyTorch act() epsilon-greedy branch (host random.random()/randrange) is
# host-side control flow; the greedy path is just jnp.argmax(dqn_forward(...), axis=-1).

if __name__ == "__main__":
    n_observations = 8   # flappy-bird style state vector
    n_actions = 2
    batch = 2

    key = jax.random.PRNGKey(0)
    kx, kp = jax.random.split(key)
    x = jax.random.normal(kx, (batch, n_observations), jnp.float32)
    params = make_params(kp, n_observations, n_actions)

    prepped, n_act = prepare_params(params)   # one-time padded/bf16 device params
    out = dqn_forward(x, prepped, n_actions=n_act)
    out = jax.block_until_ready(out)

    ref = dqn_reference(x, params)
    assert out.shape == (batch, n_actions)
    # bf16 weights/activations with f32 MXU accumulation -> loose tolerance vs f32 ref.
    assert jnp.allclose(out, ref, atol=2e-2, rtol=2e-2), (
        f"max abs diff {jnp.max(jnp.abs(out - ref))}")

    print("KERNEL_OK")
</pallas_src>

<mosaic_0001>
module attributes {stable_mosaic.version = 11 : i64} {
  func.func @dqn_kernel(%arg0: i32, %arg1: memref<8x8xf32, #tpu.memory_space<vmem>>, %arg2: memref<8x128xbf16, #tpu.memory_space<vmem>>, %arg3: memref<1x128xf32, #tpu.memory_space<vmem>>, %arg4: memref<128x128xbf16, #tpu.memory_space<vmem>>, %arg5: memref<1x128xf32, #tpu.memory_space<vmem>>, %arg6: memref<128x128xbf16, #tpu.memory_space<vmem>>, %arg7: memref<1x128xf32, #tpu.memory_space<vmem>>, %arg8: memref<8x2xf32, #tpu.memory_space<vmem>>) attributes {dimension_semantics = [#tpu.dimension_semantics<parallel>], iteration_bounds = array<i64: 1>, scalar_prefetch = 0 : i64, scratch_operands = 0 : i64, tpu.core_type = #tpu.core_type<tc>, window_params = [{transform_indices = @transform_0, window_bounds = array<i64: 8, 8>}, {pipeline_mode = #tpu.pipeline_mode<synchronous>, transform_indices = @transform_1, window_bounds = array<i64: 8, 128>}, {pipeline_mode = #tpu.pipeline_mode<synchronous>, transform_indices = @transform_2, window_bounds = array<i64: 1, 128>}, {pipeline_mode = #tpu.pipeline_mode<synchronous>, transform_indices = @transform_3, window_bounds = array<i64: 128, 128>}, {pipeline_mode = #tpu.pipeline_mode<synchronous>, transform_indices = @transform_4, window_bounds = array<i64: 1, 128>}, {pipeline_mode = #tpu.pipeline_mode<synchronous>, transform_indices = @transform_5, window_bounds = array<i64: 128, 128>}, {pipeline_mode = #tpu.pipeline_mode<synchronous>, transform_indices = @transform_6, window_bounds = array<i64: 1, 128>}, {transform_indices = @transform_7, window_bounds = array<i64: 8, 2>}]} {
    %c0 = arith.constant 0 : index
    %c0_0 = arith.constant 0 : index
    %0 = vector.load %arg1[%c0, %c0_0] : memref<8x8xf32, #tpu.memory_space<vmem>>, vector<8x8xf32>
    %1 = arith.truncf %0 : vector<8x8xf32> to vector<8x8xbf16>
    %c0_1 = arith.constant 0 : index
    %c0_2 = arith.constant 0 : index
    %2 = vector.load %arg2[%c0_1, %c0_2] : memref<8x128xbf16, #tpu.memory_space<vmem>>, vector<8x128xbf16>
    %cst = arith.constant dense<0.000000e+00> : vector<8x128xf32>
    %3 = tpu.matmul %1, %2, %cst {dimension_numbers = #tpu.dot_dimension_numbers<[1], [0], [0], [1], [0, 0, 1, 1], [], []>} : vector<8x8xbf16>, vector<8x128xbf16>, vector<8x128xf32> -> vector<8x128xf32>
    %c0_3 = arith.constant 0 : index
    %c0_4 = arith.constant 0 : index
    %4 = vector.load %arg3[%c0_3, %c0_4] : memref<1x128xf32, #tpu.memory_space<vmem>>, vector<1x128xf32>
    %5 = vector.broadcast %4 : vector<1x128xf32> to vector<8x128xf32>
    %6 = arith.addf %3, %5 : vector<8x128xf32>
    %cst_5 = arith.constant 0.000000e+00 : f32
    %7 = vector.broadcast %cst_5 : f32 to vector<8x128xf32>
    %8 = arith.maximumf %6, %7 : vector<8x128xf32>
    %9 = arith.truncf %8 : vector<8x128xf32> to vector<8x128xbf16>
    %c0_6 = arith.constant 0 : index
    %c0_7 = arith.constant 0 : index
    %10 = vector.load %arg4[%c0_6, %c0_7] : memref<128x128xbf16, #tpu.memory_space<vmem>>, vector<128x128xbf16>
    %cst_8 = arith.constant dense<0.000000e+00> : vector<8x128xf32>
    %11 = tpu.matmul %9, %10, %cst_8 {dimension_numbers = #tpu.dot_dimension_numbers<[1], [0], [0], [1], [0, 0, 1, 1], [], []>} : vector<8x128xbf16>, vector<128x128xbf16>, vector<8x128xf32> -> vector<8x128xf32>
    %c0_9 = arith.constant 0 : index
    %c0_10 = arith.constant 0 : index
    %12 = vector.load %arg5[%c0_9, %c0_10] : memref<1x128xf32, #tpu.memory_space<vmem>>, vector<1x128xf32>
    %13 = vector.broadcast %12 : vector<1x128xf32> to vector<8x128xf32>
    %14 = arith.addf %11, %13 : vector<8x128xf32>
    %cst_11 = arith.constant 0.000000e+00 : f32
    %15 = vector.broadcast %cst_11 : f32 to vector<8x128xf32>
    %16 = arith.maximumf %14, %15 : vector<8x128xf32>
    %17 = arith.truncf %16 : vector<8x128xf32> to vector<8x128xbf16>
    %c0_12 = arith.constant 0 : index
    %c0_13 = arith.constant 0 : index
    %18 = vector.load %arg6[%c0_12, %c0_13] : memref<128x128xbf16, #tpu.memory_space<vmem>>, vector<128x128xbf16>
    %cst_14 = arith.constant dense<0.000000e+00> : vector<8x128xf32>
    %19 = tpu.matmul %17, %18, %cst_14 {dimension_numbers = #tpu.dot_dimension_numbers<[1], [0], [0], [1], [0, 0, 1, 1], [], []>} : vector<8x128xbf16>, vector<128x128xbf16>, vector<8x128xf32> -> vector<8x128xf32>
    %c0_15 = arith.constant 0 : index
    %c0_16 = arith.constant 0 : index
    %20 = vector.load %arg7[%c0_15, %c0_16] : memref<1x128xf32, #tpu.memory_space<vmem>>, vector<1x128xf32>
    %21 = vector.broadcast %20 : vector<1x128xf32> to vector<8x128xf32>
    %22 = arith.addf %19, %21 : vector<8x128xf32>
    %23 = vector.extract_strided_slice %22 {offsets = [0, 0], sizes = [8, 2], strides = [1, 1]} : vector<8x128xf32> to vector<8x2xf32>
    %c0_17 = arith.constant 0 : index
    %c0_18 = arith.constant 0 : index
    %24 = vector.load %arg8[%c0_17, %c0_18] : memref<8x2xf32, #tpu.memory_space<vmem>>, vector<8x2xf32>
    tpu.vector_store %arg8[%c0_17, %c0_18], %23 {strides = array<i32>} : memref<8x2xf32, #tpu.memory_space<vmem>>, vector<8x2xf32>,
    return
  }
  func.func @transform_0(%arg0: i32) -> (i32, i32) {
    %c0_i32 = arith.constant 0 : i32
    %c0_i32_0 = arith.constant 0 : i32
    return %arg0, %c0_i32 : i32, i32
  }
  func.func @transform_1(%arg0: i32) -> (i32, i32) {
    %c0_i32 = arith.constant 0 : i32
    %c0_i32_0 = arith.constant 0 : i32
    %c0_i32_1 = arith.constant 0 : i32
    return %c0_i32, %c0_i32_0 : i32, i32
  }
  func.func @transform_2(%arg0: i32) -> (i32, i32) {
    %c0_i32 = arith.constant 0 : i32
    %c0_i32_0 = arith.constant 0 : i32
    %c0_i32_1 = arith.constant 0 : i32
    return %c0_i32, %c0_i32_0 : i32, i32
  }
  func.func @transform_3(%arg0: i32) -> (i32, i32) {
    %c0_i32 = arith.constant 0 : i32
    %c0_i32_0 = arith.constant 0 : i32
    %c0_i32_1 = arith.constant 0 : i32
    return %c0_i32, %c0_i32_0 : i32, i32
  }
  func.func @transform_4(%arg0: i32) -> (i32, i32) {
    %c0_i32 = arith.constant 0 : i32
    %c0_i32_0 = arith.constant 0 : i32
    %c0_i32_1 = arith.constant 0 : i32
    return %c0_i32, %c0_i32_0 : i32, i32
  }
  func.func @transform_5(%arg0: i32) -> (i32, i32) {
    %c0_i32 = arith.constant 0 : i32
    %c0_i32_0 = arith.constant 0 : i32
    %c0_i32_1 = arith.constant 0 : i32
    return %c0_i32, %c0_i32_0 : i32, i32
  }
  func.func @transform_6(%arg0: i32) -> (i32, i32) {
    %c0_i32 = arith.constant 0 : i32
    %c0_i32_0 = arith.constant 0 : i32
    %c0_i32_1 = arith.constant 0 : i32
    return %c0_i32, %c0_i32_0 : i32, i32
  }
  func.func @transform_7(%arg0: i32) -> (i32, i32) {
    %c0_i32 = arith.constant 0 : i32
    %c0_i32_0 = arith.constant 0 : i32
    return %arg0, %c0_i32 : i32, i32
  }
}

</mosaic_0001>

<bundles_post_ra>
// kernel: dqn_forward.1
= control target key start
LH: loop header
LB: loop body
LE: loop exit
PB: predicated region body
PF: predicated region fallthrough
CT: control target
= control target key end

     0   :  { %12 = vsyncpa [#allocation3], 0  ;;  %s774_s0 = inlined_call_operand.hbm [shape: f32[2,8], index: 0, kind: input, shape index: {}]   ;;  %s775_s1 = inlined_call_operand.hbm [shape: bf16[8,128], index: 1, kind: input, shape index: {}]   ;;  %s776_s2 = inlined_call_operand.vmem [shape: f32[1,128], index: 2, kind: input, shape index: {}]   ;;  %s777_s3 = inlined_call_operand.hbm [shape: bf16[128,128], index: 3, kind: input, shape index: {}]   ;;  %s778_s4 = inlined_call_operand.vmem [shape: f32[1,128], index: 4, kind: input, shape index: {}]   ;;  %s779_s5 = inlined_call_operand.hbm [shape: bf16[128,128], index: 5, kind: input, shape index: {}]   ;;  %s780_s6 = inlined_call_operand.vmem [shape: f32[1,128], index: 6, kind: input, shape index: {}]   ;;  %s781_s7 = inlined_call_operand.hbm [shape: f32[2,2], index: 7, kind: output, shape index: {}]  }
   0x1   :  { %13 = vsyncpa [#allocation6], 0 }
   0x2   :  { %14 = vsyncpa [#allocation9], 0 }
   0x3   :  { %15 = vsyncpa [#allocation4], 0 }
   0x4   :  { %20 = vsyncadd [#allocation3], 96  ;;  %s617_s24 = smov [#allocation5]   ;;  %s618_s26 = smov [#allocation2]  }
   0x5   :  { %s34_s25 = sshll.u32 %s617_s24, 4  ;;  %s21_s27 = sshll.u32 %s618_s26, 4  ;;  %s35_s25 = int_to_ptr.vmem [resolvable:$true] %s34_s25  ;;  %s668_s27 = int_to_ptr.vmem [resolvable:$true] %s21_s27 }
   0x6   :  { %s499_s30 = scalar_lea.hbm %s775_s1, 64 }
   0x7   :  { %p500_p0 = scmp.ne.s32.totalorder %s775_s1, %s499_s30  ;;  %p503_p1 = scmp.lt.u32.totalorder %s499_s30, %s775_s1 }
   0x9   :  { %p505_p2 = pnand %p503_p1, %p500_p0 }
   0xb   :  { %508 = shalt.err (!%p505_p2)
}
   0xc   :  { %s509_s12 = scalar_lea.vmem %s35_s25, 64  ;;  %p514_p4 = scmp.lt.s32.totalorder %s35_s25, %s35_s25 }
   0xd   :  { %p510_p3 = scmp.ne.s32.totalorder %s35_s25, %s509_s12  ;;  %p515_p5 = scmp.lt.s32.totalorder %s509_s12, %s509_s12 }
   0xf   :  { %p516_p6 = por %p515_p5, %p514_p4 }
  0x11   :  { %p517_p7 = pnand %p516_p6, %p510_p3 }
  0x13   :  { %520 = shalt.err (!%p517_p7)
}
  0x14   :  { %37 = dma.hbm_to_vmem [thread:$0]  %s775_s1, 64, %s35_s25, [#allocation6]  }
  0x15   :  { %s521_s17 = scalar_lea.hbm %s774_s0, 32 }
  0x16   :  { %p522_p8 = scmp.ne.s32.totalorder %s774_s0, %s521_s17  ;;  %p525_p9 = scmp.lt.u32.totalorder %s521_s17, %s774_s0 }
  0x18   :  { %p527_p10 = pnand %p525_p9, %p522_p8 }
  0x1a   :  { %530 = shalt.err (!%p527_p10)
}
  0x1b   :  { %s531_s22 = scalar_lea.vmem %s668_s27, 32  ;;  %s535_s1 = scalar_lea.vmem %s668_s27, 128 }
  0x1c   :  { %p532_p11 = scmp.ne.s32.totalorder %s668_s27, %s531_s22  ;;  %p536_p12 = scmp.lt.s32.totalorder %s668_s27, %s668_s27 }
  0x1d   :  { %p537_p13 = scmp.lt.s32.totalorder %s535_s1, %s531_s22 }
  0x1f   :  { %p538_p0 = por %p537_p13, %p536_p12 }
  0x21   :  { %p539_p1 = pnand %p538_p0, %p532_p11 }
  0x23   :  { %542 = shalt.err (!%p539_p1)
}
  0x24   :  { %s619_s23 = smov 32   ;;  %s620_s24 = smov 2  }
  0x25   :  { %27 = dma.hbm_to_vmem [thread:$0]  %s774_s0, 32, %s668_s27, [#allocation3], %s619_s23, %s619_s23, %s620_s24  }
  0x26   :  { %s621_s28 = smov [#allocation7]   ;;  %s543_s9 = scalar_lea.hbm %s777_s3, 1024 }
  0x27   :  { %s45_s29 = sshll.u32 %s621_s28, 4  ;;  %p544_p2 = scmp.ne.s32.totalorder %s777_s3, %s543_s9  ;;  %s46_s29 = int_to_ptr.vmem [resolvable:$true] %s45_s29 }
  0x28   :  { %p547_p3 = scmp.lt.u32.totalorder %s543_s9, %s777_s3 }
  0x2a   :  { %p549_p4 = pnand %p547_p3, %p544_p2 }
  0x2c   :  { %552 = shalt.err (!%p549_p4)
}
  0x2d   :  { %s553_s14 = scalar_lea.vmem %s46_s29, 1024  ;;  %p558_p6 = scmp.lt.s32.totalorder %s46_s29, %s46_s29 }
  0x2e   :  { %p554_p5 = scmp.ne.s32.totalorder %s46_s29, %s553_s14  ;;  %p559_p7 = scmp.lt.s32.totalorder %s553_s14, %s553_s14 }
  0x30   :  { %p560_p8 = por %p559_p7, %p558_p6 }
  0x32   :  { %p561_p9 = pnand %p560_p8, %p554_p5 }
  0x34   :  { %564 = shalt.err (!%p561_p9)
}
  0x35   :  { %s622_s0 = smov 64   ;;  %s623_s27 = smov 4  }
  0x36   :  { %51 = dma.hbm_to_vmem [thread:$0]  %s777_s3, 1024, %s46_s29, [#allocation6], %s622_s0, %s622_s0, %s623_s27  }
  0x37   :  { %s624_s17 = smov [#allocation8]   ;;  %s565_s21 = scalar_lea.hbm %s779_s5, 1024 }
  0x38   :  { %s59_s18 = sshll.u32 %s624_s17, 4  ;;  %p566_p10 = scmp.ne.s32.totalorder %s779_s5, %s565_s21  ;;  %s60_s18 = int_to_ptr.vmem [resolvable:$true] %s59_s18 }
  0x39   :  { %p569_p11 = scmp.lt.u32.totalorder %s565_s21, %s779_s5 }
  0x3b   :  { %p571_p12 = pnand %p569_p11, %p566_p10 }
  0x3d   :  { %574 = shalt.err (!%p571_p12)
}
  0x3e   :  { %s575_s28 = scalar_lea.vmem %s60_s18, 1024  ;;  %p580_p0 = scmp.lt.s32.totalorder %s60_s18, %s60_s18 }
  0x3f   :  { %p576_p13 = scmp.ne.s32.totalorder %s60_s18, %s575_s28  ;;  %p581_p1 = scmp.lt.s32.totalorder %s575_s28, %s575_s28 }
  0x41   :  { %p582_p2 = por %p581_p1, %p580_p0 }
  0x43   :  { %p583_p3 = pnand %p582_p2, %p576_p13 }
  0x45   :  { %586 = shalt.err (!%p583_p3)
}
  0x46   :  { %65 = dma.hbm_to_vmem [thread:$0]  %s779_s5, 1024, %s60_s18, [#allocation9], %s622_s0, %s622_s0, %s623_s27  }
  0x47   :  { %609 = dma.done.wait [#allocation3], 128  }
  0x48   :  { %610 = vsyncadd [#allocation3], 4294967168 }
  0x49   :  { %611 = dma.done.wait [#allocation6], 1088  }
  0x4a   :  { %612 = vsyncadd [#allocation6], 4294966208 }
  0x4b   :  { %613 = dma.done.wait [#allocation9], 1024  }
  0x4c   :  { %614 = vsyncadd [#allocation9], 4294966272  ;;  %v625_v0 = vmov 0.0   ;;  %vm626_vm0 = vmmov 0   ;;  %vm95_vm1 = vcmask 1043456   ;;  %v81_v2 = vld [vmem:[#allocation2] sm:$0xff] }
  0x4d   :  { %426 = vmatprep.subr.bf16.mxu0 %v625_v0  ;;  %428 = vmatprep.mubr.msk.bf16.mxu0 %vm626_vm0, %v625_v0  ;;  %v83_v1 = vld [vmem:[#allocation5] sm:$0xf]  ;;  %v82_v4 = vpack.c.bf16 %v81_v2, %v81_v2  ;;  %v483_v5 = vld [vmem:[#allocation7] sm:$0xff]   ;;  %vm91_vm2 = vcmask 64512   ;;  %v484_v6 = vld [vmem:[#allocation7 + $0x8] sm:$0xff]   ;;  %vm365_vm3 = vcmask 15360  }
  0x4e   :  { %432 = vmatprep.subr.bf16.mxu1 %v625_v0  ;;  %448 = vmatprep.mubr.msk.bf16.mxu1 %vm626_vm0, %v625_v0  ;;  %v97_v3 = vsel %vm95_vm1, %v83_v1, 0  ;;  %v485_v7 = vld [vmem:[#allocation7 + $0x10] sm:$0xff]   ;;  %v486_v8 = vld [vmem:[#allocation7 + $0x18] sm:$0xff]   ;;  %v487_v9 = vld [vmem:[#allocation7 + $0x20] sm:$0xff]  }
  0x4f   :  { %427 = vmatpush3.bf16.msra.mxu0 %v97_v3  ;;  %433 = vmatpush3.bf16.msra.mxu1 %v483_v5  ;;  %v488_v10 = vld [vmem:[#allocation7 + $0x28] sm:$0xff]   ;;  %v489_v11 = vld [vmem:[#allocation7 + $0x30] sm:$0xff]   ;;  %v490_v12 = vld [vmem:[#allocation7 + $0x38] sm:$0xff]  }
  0x50   :  { %452 = vmatprep.subr.bf16.mxu0 %v625_v0  ;;  %434 = vmatprep.subr.bf16.mxu1 %v625_v0  ;;  %v491_v13 = vld [vmem:[#allocation8] sm:$0xff]   ;;  %v492_v14 = vld [vmem:[#allocation8 + $0x8] sm:$0xff]   ;;  %v493_v15 = vld [vmem:[#allocation8 + $0x10] sm:$0xff]  }
  0x51   :  { %v494_v16 = vld [vmem:[#allocation8 + $0x18] sm:$0xff]   ;;  %v495_v17 = vld [vmem:[#allocation8 + $0x20] sm:$0xff]   ;;  %v496_v18 = vld [vmem:[#allocation8 + $0x28] sm:$0xff]  }
  0x52   :  { %429 = vmatmul.mubr.msk.bf16.vlgmr.msra.gmra.mrb[0].mxu0 %vm91_vm2, %v82_v4  ;;  %v386_v19 = vld [vmem:[%s776_s2] ss:$0 sm:$0xff]  ;;  %v498_v28 = vld [vmem:[#allocation8 + $0x38] sm:$0xff]  }
  0x53   :  { %468 = vmatprep.mubr.msk.bf16.mxu0 %vm626_vm0, %v625_v0  ;;  %435 = vmatpush3.bf16.msra.mxu1 %v484_v6  ;;  %v497_v27 = vld [vmem:[#allocation8 + $0x30] sm:$0xff]  }
  0x54   :  { %436 = vmatprep.subr.bf16.mxu1 %v625_v0  ;;  %453 = vmatpush3.bf16.msra.mxu0 %v491_v13  ;;  %v388_v29 = vld [vmem:[%s778_s4] ss:$0 sm:$0xff] }
  0x55   :  { %454 = vmatprep.subr.bf16.mxu0 %v625_v0  ;;  %v397_v37 = vld [vmem:[%s780_s6] ss:$0 sm:$0xff] }
  0x57   :  { %437 = vmatpush3.bf16.msra.mxu1 %v485_v7 }
  0x58   :  { %438 = vmatprep.subr.bf16.mxu1 %v625_v0  ;;  %455 = vmatpush3.bf16.msra.mxu0 %v492_v14 }
  0x59   :  { %456 = vmatprep.subr.bf16.mxu0 %v625_v0 }
  0x5b   :  { %439 = vmatpush3.bf16.msra.mxu1 %v486_v8 }
  0x5c   :  { %440 = vmatprep.subr.bf16.mxu1 %v625_v0  ;;  %457 = vmatpush3.bf16.msra.mxu0 %v493_v15 }
  0x5d   :  { %458 = vmatprep.subr.bf16.mxu0 %v625_v0 }
  0x5f   :  { %441 = vmatpush3.bf16.msra.mxu1 %v487_v9 }
  0x60   :  { %442 = vmatprep.subr.bf16.mxu1 %v625_v0  ;;  %459 = vmatpush3.bf16.msra.mxu0 %v494_v16 }
  0x61   :  { %460 = vmatprep.subr.bf16.mxu0 %v625_v0 }
  0x63   :  { %443 = vmatpush3.bf16.msra.mxu1 %v488_v10 }
  0x64   :  { %444 = vmatprep.subr.bf16.mxu1 %v625_v0  ;;  %461 = vmatpush3.bf16.msra.mxu0 %v495_v17 }
  0x65   :  { %462 = vmatprep.subr.bf16.mxu0 %v625_v0 }
  0x67   :  { %445 = vmatpush3.bf16.msra.mxu1 %v489_v11 }
  0x68   :  { %446 = vmatprep.subr.bf16.mxu1 %v625_v0  ;;  %463 = vmatpush3.bf16.msra.mxu0 %v496_v18 }
  0x69   :  { %464 = vmatprep.subr.bf16.mxu0 %v625_v0 }
  0x6b   :  { %447 = vmatpush3.bf16.msra.mxu1 %v490_v12 }
  0x6c   :  { %465 = vmatpush3.bf16.msra.mxu0 %v497_v27 }
  0x6d   :  { %466 = vmatprep.subr.bf16.mxu0 %v625_v0 }
  0x70   :  { %467 = vmatpush3.bf16.msra.mxu0 %v498_v28 }
 0x125   :  { %v133_v20 = vpop.f32.mrb[0].mxu0 }
 0x126   :  { %v134_v21 = vadd.f32 %v386_v19, %v133_v20  ;;  %v430_v22 = vpop.f32.mrb[1].mxu0 }
 0x127   :  { %v136_v23 = vpop.f32.mrb[2].mxu0 }
 0x128   :  { %v139_v24 = vmax.f32 %v134_v21, 0.0  ;;  %v431_v25 = vpop.f32.mrb[3].mxu0 }
 0x12a   :  { %v140_v26 = vpack.c.bf16 %v139_v24, %v139_v24 }
 0x12c   :  { %449 = vmatmul.mubr.bf16.vlgmr.msra.gmra.mrb[0].mxu1 %v140_v26 }
 0x1ff   :  { %v246_v30 = vpop.f32.mrb[0].mxu1 }
 0x200   :  { %v247_v31 = vadd.f32 %v388_v29, %v246_v30  ;;  %v450_v32 = vpop.f32.mrb[1].mxu1 }
 0x201   :  { %v249_v33 = vpop.f32.mrb[2].mxu1 }
 0x202   :  { %v252_v34 = vmax.f32 %v247_v31, 0.0  ;;  %v451_v35 = vpop.f32.mrb[3].mxu1 }
 0x204   :  { %v253_v36 = vpack.c.bf16 %v252_v34, %v252_v34 }
 0x206   :  { %469 = vmatmul.mubr.bf16.vlgmr.msra.gmra.mrb[4].mxu0 %v253_v36 }
 0x2d9   :  { %v359_v38 = vpop.f32.mrb[4].mxu0 }
 0x2da   :  { %v360_v39 = vadd.f32 %v397_v37, %v359_v38  ;;  %v470_v40 = vpop.f32.mrb[5].mxu0 }
 0x2db   :  { %v362_v41 = vpop.f32.mrb[6].mxu0 }
 0x2dc   :  { %366 = vst.msk [vmem:[#allocation10] sm:$0xff] %vm365_vm3, %v360_v39  ;;  %v471_v42 = vpop.f32.mrb[7].mxu0 }
 0x2dd   :  { %371 = vsyncadd [#allocation4], 96  ;;  %s627_s4 = smov [#allocation10]  }
 0x2de   :  { %s372_s11 = sshll.u32 %s627_s4, 4  ;;  %s373_s11 = int_to_ptr.vmem [resolvable:$true] %s372_s11 }
 0x2df   :  { %s587_s12 = scalar_lea.vmem %s373_s11, 32  ;;  %s591_s13 = scalar_lea.vmem %s373_s11, 128 }
 0x2e0   :  { %p588_p4 = scmp.ne.s32.totalorder %s373_s11, %s587_s12  ;;  %p592_p5 = scmp.lt.s32.totalorder %s373_s11, %s373_s11 }
 0x2e1   :  { %p593_p6 = scmp.lt.s32.totalorder %s591_s13, %s587_s12 }
 0x2e3   :  { %p594_p7 = por %p593_p6, %p592_p5 }
 0x2e5   :  { %p595_p8 = pnand %p594_p7, %p588_p4 }
 0x2e7   :  { %598 = shalt.err (!%p595_p8)
}
 0x2e8   :  { %s599_s0 = scalar_lea.hbm %s781_s7, 32 }
 0x2e9   :  { %p600_p9 = scmp.ne.s32.totalorder %s781_s7, %s599_s0  ;;  %p603_p10 = scmp.lt.u32.totalorder %s599_s0, %s781_s7 }
 0x2eb   :  { %p605_p11 = pnand %p603_p10, %p600_p9 }
 0x2ed   :  { %608 = shalt.err (!%p605_p11)
}
 0x2ee   :  { %378 = dma.vmem_to_hbm [thread:$0]  %s373_s11, 32, %s781_s7, [#allocation4], %s619_s23, %s619_s23, %s620_s24  }
 0x2ef   :  { %615 = dma.done.wait [#allocation4], 128  }
 0x2f0   :  { %616 = vsyncadd [#allocation4], 4294967168 }
 0x2f1   :  { %382 = vsyncpa [#allocation3], 1 }
 0x2f2   :  { %383 = vsyncpa [#allocation6], 1 }
 0x2f3   :  { %384 = vsyncpa [#allocation9], 1 }
 0x2f4   :  { %385 = vsyncpa [#allocation4], 1 }

</bundles_post_ra>
